<compile_context>
chip_gen: v5e
topology: v5e:2x2
jax: 0.10.0
libtpu: 0.0.40
codegen_flags: <defaults>
</compile_context>

<pallas_src>
import jax
import jax.numpy as jnp
import numpy as np
from jax.experimental import pallas as pl
from jax.experimental.pallas import tpu as pltpu

LN_EPS = 1e-12


def _round_up(x, m):
    return ((x + m - 1) // m) * m


def bert_att_output_kernel(x_ref, res_ref, w_ref, p_ref, out_ref):
    # x_ref:   (tm, H) bf16  attention-output rows
    # res_ref: (tm, H) bf16  residual rows
    # w_ref:   (H, H)  bf16  dense weight, pre-transposed to (in, out)
    # p_ref:   (3, H)  f32   packed [bias; gamma; beta]
    # out_ref: (tm, H)       output rows

    # Dense: native bf16 MXU matmul, f32 accumulate.
    h = jnp.dot(x_ref[...], w_ref[...], preferred_element_type=jnp.float32)

    p = p_ref[...]                                  # (3, H) f32
    bias, gamma, beta = p[0:1], p[1:2], p[2:3]      # each (1, H)

    # Dropout is identity in inference mode.
    # Bias + residual add, in f32.
    h = h + bias + res_ref[...].astype(jnp.float32)

    # LayerNorm over hidden dim (biased variance, eps=1e-12), stats in f32.
    mean = jnp.mean(h, axis=-1, keepdims=True)
    centered = h - mean
    var = jnp.mean(centered * centered, axis=-1, keepdims=True)
    normed = centered * jax.lax.rsqrt(var + LN_EPS)
    out_ref[...] = (normed * gamma + beta).astype(out_ref.dtype)


def prepare_params(params, *, compute_dtype=jnp.bfloat16):
    """One-time parameter packing; keeps the transpose/cast out of the per-call path."""
    h = params["bias"].shape[0]
    w_t = jnp.asarray(params["weight"]).T.astype(compute_dtype)      # (in, out)
    ln_dense = jnp.stack(
        [params["bias"], params["gamma"], params["beta"]], axis=0
    ).astype(jnp.float32)                                            # (3, H)
    assert w_t.shape == (h, h)
    return {"w_t": w_t, "ln_dense": ln_dense}


def _pick_tm(n_rows, tm_max, sub):
    """Row tile: large (amortize ~0.35us/step), multiple of `sub`, and at least
    two grid steps when the row count allows (megacore / v7x 2-TC split)."""
    if n_rows % sub != 0:
        # Single full-extent block for small N, otherwise an aligned big tile
        # with a ragged, Pallas-masked tail block.
        return n_rows if n_rows <= tm_max else tm_max
    tm = min(tm_max, n_rows)
    if tm == n_rows and n_rows >= 2 * sub:
        tm = _round_up((n_rows + 1) // 2, sub)
    return tm


def bert_att_output(hidden_states, input_tensor, prepared, *, tm=1024,
                    out_dtype=jnp.bfloat16):
    """hidden_states, input_tensor: (B, S, H) -> (B, S, H) in `out_dtype`."""
    B, S, H = hidden_states.shape
    N = B * S
    w_t = prepared["w_t"]
    ln_dense = prepared["ln_dense"]
    compute_dtype = w_t.dtype
    sub = 16 if compute_dtype == jnp.bfloat16 else 8

    x = hidden_states.reshape(N, H).astype(compute_dtype)
    res = input_tensor.reshape(N, H).astype(compute_dtype)

    tm = _pick_tm(N, tm, sub)
    grid = (pl.cdiv(N, tm),)

    itemsize = jnp.dtype(compute_dtype).itemsize
    cost = pl.CostEstimate(
        flops=2 * N * H * H,
        transcendentals=N,                               # one rsqrt per row
        bytes_accessed=(2 * N * H * itemsize             # x + residual reads
                        + N * H * jnp.dtype(out_dtype).itemsize   # output write
                        + H * H * itemsize               # weight (once)
                        + 3 * H * 4))                    # bias/gamma/beta

    out = pl.pallas_call(
        bert_att_output_kernel,
        out_shape=jax.ShapeDtypeStruct((N, H), out_dtype),
        grid_spec=pltpu.PrefetchScalarGridSpec(
            num_scalar_prefetch=0,
            grid=grid,
            in_specs=[
                pl.BlockSpec((tm, H), lambda i: (i, 0)),   # hidden_states rows
                pl.BlockSpec((tm, H), lambda i: (i, 0)),   # residual rows
                pl.BlockSpec((H, H), lambda i: (0, 0),     # dense weight (in, out)
                             pipeline_mode=pl.Buffered(1)),
                pl.BlockSpec((3, H), lambda i: (0, 0),     # packed bias/gamma/beta
                             pipeline_mode=pl.Buffered(1)),
            ],
            out_specs=pl.BlockSpec((tm, H), lambda i: (i, 0)),
        ),
        compiler_params=pltpu.CompilerParams(
            dimension_semantics=("parallel",)),
        cost_estimate=cost,
    )(x, res, w_t, ln_dense)

    return out.reshape(B, S, H)


def init_params(key, hidden_size):
    k_w, k_b = jax.random.split(key)
    bound = 1.0 / np.sqrt(hidden_size)
    weight = jax.random.uniform(k_w, (hidden_size, hidden_size), jnp.float32,
                                -bound, bound)   # (out, in), PyTorch layout
    bias = jax.random.uniform(k_b, (hidden_size,), jnp.float32, -bound, bound)
    return {
        "weight": weight,
        "bias": bias,
        "gamma": jnp.ones((hidden_size,), jnp.float32),
        "beta": jnp.zeros((hidden_size,), jnp.float32),
    }


def reference(hidden_states, input_tensor, params):
    h = jnp.einsum("bsh,oh->bso", hidden_states, params["weight"],
                   precision=jax.lax.Precision.HIGHEST) + params["bias"]
    h = h + input_tensor
    mean = jnp.mean(h, axis=-1, keepdims=True)
    var = jnp.mean((h - mean) ** 2, axis=-1, keepdims=True)
    normed = (h - mean) / jnp.sqrt(var + LN_EPS)
    return normed * params["gamma"] + params["beta"]


if __name__ == "__main__":
    # Small synthetic config consistent with the module's forward.
    B, S, H = 2, 8, 32

    key = jax.random.PRNGKey(0)
    k_params, k_hid, k_inp = jax.random.split(key, 3)
    params = init_params(k_params, H)
    prepared = prepare_params(params)          # one-time transpose/cast/pack

    hidden_states = jax.random.uniform(k_hid, (B, S, H), jnp.float32)
    input_tensor = jax.random.uniform(k_inp, (B, S, H), jnp.float32)

    out = bert_att_output(hidden_states, input_tensor, prepared)
    out = jax.block_until_ready(out)

    # Reference: f32 math on the same bf16-quantized operands the kernel streams,
    # so the only remaining deltas are MXU accumulation order and the bf16 output.
    ref = reference(
        hidden_states.astype(jnp.bfloat16).astype(jnp.float32),
        input_tensor.astype(jnp.bfloat16).astype(jnp.float32),
        {**params, "weight": prepared["w_t"].T.astype(jnp.float32)})

    np.testing.assert_allclose(np.asarray(out.astype(jnp.float32)),
                               np.asarray(ref),
                               rtol=2e-2, atol=2e-2)
    print("KERNEL_OK")
</pallas_src>

<mosaic_0001>
module attributes {stable_mosaic.version = 11 : i64} {
  func.func @bert_att_output_kernel(%arg0: i32, %arg1: memref<16x32xbf16, #tpu.memory_space<vmem>>, %arg2: memref<16x32xbf16, #tpu.memory_space<vmem>>, %arg3: memref<32x32xbf16, #tpu.memory_space<vmem>>, %arg4: memref<3x32xf32, #tpu.memory_space<vmem>>, %arg5: memref<16x32xbf16, #tpu.memory_space<vmem>>) attributes {dimension_semantics = [#tpu.dimension_semantics<parallel>], iteration_bounds = array<i64: 1>, scalar_prefetch = 0 : i64, scratch_operands = 0 : i64, tpu.core_type = #tpu.core_type<tc>, window_params = [{transform_indices = @transform_0, window_bounds = array<i64: 16, 32>}, {transform_indices = @transform_1, window_bounds = array<i64: 16, 32>}, {pipeline_mode = #tpu.pipeline_mode<synchronous>, transform_indices = @transform_2, window_bounds = array<i64: 32, 32>}, {pipeline_mode = #tpu.pipeline_mode<synchronous>, transform_indices = @transform_3, window_bounds = array<i64: 3, 32>}, {transform_indices = @transform_4, window_bounds = array<i64: 16, 32>}]} {
    %c0 = arith.constant 0 : index
    %c0_0 = arith.constant 0 : index
    %0 = vector.load %arg1[%c0, %c0_0] : memref<16x32xbf16, #tpu.memory_space<vmem>>, vector<16x32xbf16>
    %c0_1 = arith.constant 0 : index
    %c0_2 = arith.constant 0 : index
    %1 = vector.load %arg3[%c0_1, %c0_2] : memref<32x32xbf16, #tpu.memory_space<vmem>>, vector<32x32xbf16>
    %cst = arith.constant dense<0.000000e+00> : vector<16x32xf32>
    %2 = tpu.matmul %0, %1, %cst {dimension_numbers = #tpu.dot_dimension_numbers<[1], [0], [0], [1], [0, 0, 1, 1], [], []>} : vector<16x32xbf16>, vector<32x32xbf16>, vector<16x32xf32> -> vector<16x32xf32>
    %c0_3 = arith.constant 0 : index
    %c0_4 = arith.constant 0 : index
    %3 = vector.load %arg4[%c0_3, %c0_4] : memref<3x32xf32, #tpu.memory_space<vmem>>, vector<3x32xf32>
    %4 = vector.extract_strided_slice %3 {offsets = [0, 0], sizes = [1, 32], strides = [1, 1]} : vector<3x32xf32> to vector<1x32xf32>
    %5 = vector.extract_strided_slice %3 {offsets = [1, 0], sizes = [1, 32], strides = [1, 1]} : vector<3x32xf32> to vector<1x32xf32>
    %6 = vector.extract_strided_slice %3 {offsets = [2, 0], sizes = [1, 32], strides = [1, 1]} : vector<3x32xf32> to vector<1x32xf32>
    %7 = vector.broadcast %4 : vector<1x32xf32> to vector<16x32xf32>
    %8 = arith.addf %2, %7 : vector<16x32xf32>
    %c0_5 = arith.constant 0 : index
    %c0_6 = arith.constant 0 : index
    %9 = vector.load %arg2[%c0_5, %c0_6] : memref<16x32xbf16, #tpu.memory_space<vmem>>, vector<16x32xbf16>
    %10 = arith.extf %9 : vector<16x32xbf16> to vector<16x32xf32>
    %11 = arith.addf %8, %10 : vector<16x32xf32>
    %cst_7 = arith.constant dense<0.000000e+00> : vector<16xf32>
    %12 = vector.multi_reduction <add>, %11, %cst_7 [1] : vector<16x32xf32> to vector<16xf32>
    %13 = vector.shape_cast %12 : vector<16xf32> to vector<16x1xf32>
    %cst_8 = arith.constant 3.200000e+01 : f32
    %14 = vector.broadcast %cst_8 : f32 to vector<16x1xf32>
    %15 = arith.divf %13, %14 : vector<16x1xf32>
    %16 = vector.broadcast %15 : vector<16x1xf32> to vector<16x32xf32>
    %17 = arith.subf %11, %16 : vector<16x32xf32>
    %18 = arith.mulf %17, %17 : vector<16x32xf32>
    %cst_9 = arith.constant dense<0.000000e+00> : vector<16xf32>
    %19 = vector.multi_reduction <add>, %18, %cst_9 [1] : vector<16x32xf32> to vector<16xf32>
    %20 = vector.shape_cast %19 : vector<16xf32> to vector<16x1xf32>
    %cst_10 = arith.constant 3.200000e+01 : f32
    %21 = vector.broadcast %cst_10 : f32 to vector<16x1xf32>
    %22 = arith.divf %20, %21 : vector<16x1xf32>
    %cst_11 = arith.constant 9.99999996E-13 : f32
    %23 = vector.broadcast %cst_11 : f32 to vector<16x1xf32>
    %24 = arith.addf %22, %23 : vector<16x1xf32>
    %25 = math.rsqrt %24 : vector<16x1xf32>
    %26 = vector.broadcast %25 : vector<16x1xf32> to vector<16x32xf32>
    %27 = arith.mulf %17, %26 : vector<16x32xf32>
    %28 = vector.broadcast %5 : vector<1x32xf32> to vector<16x32xf32>
    %29 = arith.mulf %27, %28 : vector<16x32xf32>
    %30 = vector.broadcast %6 : vector<1x32xf32> to vector<16x32xf32>
    %31 = arith.addf %29, %30 : vector<16x32xf32>
    %32 = arith.truncf %31 : vector<16x32xf32> to vector<16x32xbf16>
    %c0_12 = arith.constant 0 : index
    %c0_13 = arith.constant 0 : index
    %33 = vector.load %arg5[%c0_12, %c0_13] : memref<16x32xbf16, #tpu.memory_space<vmem>>, vector<16x32xbf16>
    tpu.vector_store %arg5[%c0_12, %c0_13], %32 {strides = array<i32>} : memref<16x32xbf16, #tpu.memory_space<vmem>>, vector<16x32xbf16>,
    return
  }
  func.func @transform_0(%arg0: i32) -> (i32, i32) {
    %c0_i32 = arith.constant 0 : i32
    %c0_i32_0 = arith.constant 0 : i32
    return %arg0, %c0_i32 : i32, i32
  }
  func.func @transform_1(%arg0: i32) -> (i32, i32) {
    %c0_i32 = arith.constant 0 : i32
    %c0_i32_0 = arith.constant 0 : i32
    return %arg0, %c0_i32 : i32, i32
  }
  func.func @transform_2(%arg0: i32) -> (i32, i32) {
    %c0_i32 = arith.constant 0 : i32
    %c0_i32_0 = arith.constant 0 : i32
    %c0_i32_1 = arith.constant 0 : i32
    return %c0_i32, %c0_i32_0 : i32, i32
  }
  func.func @transform_3(%arg0: i32) -> (i32, i32) {
    %c0_i32 = arith.constant 0 : i32
    %c0_i32_0 = arith.constant 0 : i32
    %c0_i32_1 = arith.constant 0 : i32
    return %c0_i32, %c0_i32_0 : i32, i32
  }
  func.func @transform_4(%arg0: i32) -> (i32, i32) {
    %c0_i32 = arith.constant 0 : i32
    %c0_i32_0 = arith.constant 0 : i32
    return %arg0, %c0_i32 : i32, i32
  }
}

</mosaic_0001>

<bundles_post_ra>
// kernel: tpu_custom_call.1
= control target key start
LH: loop header
LB: loop body
LE: loop exit
PB: predicated region body
PF: predicated region fallthrough
CT: control target
= control target key end

     0   :  { %9 = vsyncpa [#allocation3], 0  ;;  %s444_s0 = inlined_call_operand.hbm [shape: bf16[16,32], index: 0, kind: input, shape index: {}]   ;;  %s445_s1 = inlined_call_operand.hbm [shape: bf16[16,32], index: 1, kind: input, shape index: {}]   ;;  %s446_s2 = inlined_call_operand.hbm [shape: bf16[32,32], index: 2, kind: input, shape index: {}]   ;;  %s447_s3 = inlined_call_operand.hbm [shape: f32[3,32], index: 3, kind: input, shape index: {}]   ;;  %s448_s4 = inlined_call_operand.hbm [shape: bf16[16,32], index: 4, kind: output, shape index: {}]  }
   0x1   :  { %10 = vsyncpa [#allocation6], 0 }
   0x2   :  { %11 = vsyncpa [#allocation9], 0 }
   0x3   :  { %12 = vsyncpa [#allocation4], 0  ;;  %s30_s17 = sshll.u32 %s445_s1, 4  ;;  %s374_s18 = smov [#allocation5]   ;;  %s31_s17 = int_to_ptr.hbm [resolvable:$true] %s30_s17 }
   0x4   :  { %s32_s19 = sshll.u32 %s374_s18, 4  ;;  %s17_s22 = sshll.u32 %s444_s0, 4  ;;  %s33_s19 = int_to_ptr.vmem [resolvable:$true] %s32_s19  ;;  %s18_s22 = int_to_ptr.hbm [resolvable:$true] %s17_s22 }
   0x5   :  { %s375_s23 = smov 64   ;;  %s376_s24 = smov 4  }
   0x6   :  { %38 = dma.hbm_to_vmem [thread:$0]  %s31_s17, 128, %s33_s19, [#allocation6], %s375_s23, %s375_s23, %s376_s24  }
   0x7   :  { %s377_s25 = smov [#allocation2]   ;;  %s43_s1 = sshll.u32 %s446_s2, 4  ;;  %s44_s1 = int_to_ptr.hbm [resolvable:$true] %s43_s1 }
   0x8   :  { %s19_s26 = sshll.u32 %s377_s25, 4  ;;  %s57_s30 = sshll.u32 %s447_s3, 4  ;;  %s20_s26 = int_to_ptr.vmem [resolvable:$true] %s19_s26  ;;  %s58_s30 = int_to_ptr.hbm [resolvable:$true] %s57_s30 }
   0x9   :  { %25 = dma.hbm_to_vmem [thread:$0]  %s18_s22, 128, %s20_s26, [#allocation3], %s375_s23, %s375_s23, %s376_s24  }
   0xa   :  { %s378_s5 = smov [#allocation7]   ;;  %s379_s7 = smov [#allocation8]  }
   0xb   :  { %s45_s6 = sshll.u32 %s378_s5, 4  ;;  %s59_s2 = sshll.u32 %s379_s7, 4  ;;  %s46_s6 = int_to_ptr.vmem [resolvable:$true] %s45_s6  ;;  %s60_s2 = int_to_ptr.vmem [resolvable:$true] %s59_s2 }
   0xc   :  { %51 = dma.hbm_to_vmem [thread:$0]  %s44_s1, 256, %s46_s6, [#allocation6], %s375_s23, %s375_s23, %s376_s24  }
   0xd   :  { %62 = dma.hbm_to_vmem [thread:$0]  %s58_s30, 64, %s60_s2, [#allocation9]  }
   0xe   :  { %366 = dma.done.wait [#allocation3], 128  }
   0xf   :  { %367 = vsyncadd [#allocation3], 4294967168 }
  0x10   :  { %368 = dma.done.wait [#allocation6], 384  }
  0x11   :  { %369 = vsyncadd [#allocation6], 4294966912 }
  0x12   :  { %370 = dma.done.wait [#allocation9], 64  }
  0x13   :  { %371 = vsyncadd [#allocation9], 4294967232  ;;  %v227_v0 = vld [vmem:[#allocation7 + $0x8] sm:$0xff]  ;;  %v226_v1 = vld [vmem:[#allocation7] sm:$0xff]  ;;  %vm105_vm0 = vcmask 261120   ;;  %v380_v16 = vmov 32.0  }
  0x14   :  { %115 = vmatpush.bf16.msra.mxu0 %v227_v0  ;;  %v225_v2 = vld [vmem:[#allocation2] sm:$0xff]  ;;  %v229_v4 = vld [vmem:[#allocation5] sm:$0xff]   ;;  %240 = vrcp.f32 %v380_v16  ;;  %vm188_vm7 = vcmask 257024   ;;  %s381_s3 = smov [#allocation10]   ;;  %s197_s11 = sshll.u32 %s448_s4, 4  ;;  %s198_s11 = int_to_ptr.hbm [resolvable:$true] %s197_s11 }
  0x15   :  { %v429_v3 = vld [vmem:[#allocation8] sm:$0x7]  ;;  %v230_v6 = vunpack.c.l.bf16 %v229_v4  ;;  %v231_v11 = vunpack.c.h.bf16 %v229_v4  ;;  %s195_s8 = sshll.u32 %s381_s3, 4  ;;  %s196_s8 = int_to_ptr.vmem [resolvable:$true] %s195_s8 }
  0x16   :  { %v87_v5 = vperm.slane %v429_v3, 0  ;;  %v180_v47 = vperm.slane %v429_v3, 1  ;;  %v183_v50 = vperm.slane %v429_v3, 2 }
  0x18   :  { %116 = vmatpush.bf16.msra.mxu0 %v226_v1 }
  0x1a   :  { %v241_v17 = vpop.eup %240 }
  0x1b   :  { %224 = vmatmul.msk.bf16.vlgmr.msra.gmra.mxu0 %vm105_vm0, %v225_v2  ;;  %v136_v18 = vmul.f32 32.0, %v241_v17  ;;  %vm140_vm1 = vweird.f32 %v241_v17 }
  0x1d   :  { %v137_v19 = vsub.f32 1.0, %v136_v18 }
  0x1f   :  { %v138_v20 = vmul.f32 %v241_v17, %v137_v19 }
  0x21   :  { %v139_v21 = vadd.f32 %v241_v17, %v138_v20 }
  0x23   :  { %v141_v22 = vsel %vm140_vm1, %v241_v17, %v139_v21 }
  0x98   :  { %v118_v7 = vpop.f32.mrf.mxu0 }
  0x99   :  { %v119_v8 = vadd.f32 %v118_v7, %v87_v5 }
  0x9b   :  { %v127_v9 = vadd.f32 %v230_v6, %v119_v8 }
  0x9d   :  { %v129_v10 = vsel %vm105_vm0, %v127_v9, 0.0 }
  0x9e   :  { %130 = vadd.xlane.f32.xlu0 %v129_v10 }
  0xa0   :  { %v120_v12 = vpop.f32.mrf.mxu0 }
  0xa1   :  { %v121_v13 = vadd.f32 %v120_v12, %v87_v5 }
  0xa3   :  { %v128_v14 = vadd.f32 %v231_v11, %v121_v13 }
  0xa5   :  { %v132_v15 = vsel %vm105_vm0, %v128_v14, 0.0 }
  0xa6   :  { %133 = vadd.xlane.f32.xlu0 %v132_v15 }
 0x111   :  { %v131_v23 = vpop.xlane.xlu0 %130 }
 0x112   :  { %v142_v24 = vmul.f32 %v141_v22, %v131_v23 }
 0x114   :  { %v144_v25 = vsub.f32 %v127_v9, %v142_v24 }
 0x116   :  { %v146_v26 = vmul.f32 %v144_v25, %v144_v25 }
 0x118   :  { %v148_v27 = vsel %vm105_vm0, %v146_v26, 0.0 }
 0x119   :  { %149 = vadd.xlane.f32.xlu1 %v148_v27  ;;  %v134_v28 = vpop.xlane.xlu0 %133 }
 0x11a   :  { %v143_v29 = vmul.f32 %v141_v22, %v134_v28 }
 0x11c   :  { %v145_v30 = vsub.f32 %v128_v14, %v143_v29 }
 0x11e   :  { %v147_v31 = vmul.f32 %v145_v30, %v145_v30 }
 0x120   :  { %v151_v32 = vsel %vm105_vm0, %v147_v31, 0.0 }
 0x121   :  { %152 = vadd.xlane.f32.xlu1 %v151_v32 }
 0x18c   :  { %v150_v33 = vpop.xlane.xlu1 %149 }
 0x18d   :  { %v154_v34 = vmul.f32 %v150_v33, %v141_v22 }
 0x18f   :  { %v156_v35 = vadd.f32 1e-12, %v154_v34 }
 0x191   :  { %242 = vrsqrt.f32 %v156_v35  ;;  %vm164_vm3 = vweird.f32 %v156_v35 }
 0x194   :  { %v153_v36 = vpop.xlane.xlu1 %152 }
 0x195   :  { %v155_v37 = vmul.f32 %v153_v36, %v141_v22 }
 0x197   :  { %v243_v38 = vpop.eup %242  ;;  %v157_v39 = vadd.f32 1e-12, %v155_v37 }
 0x198   :  { %v159_v40 = vmul.f32 %v243_v38, %v156_v35  ;;  %vm165_vm2 = vweird.f32 %v243_v38 }
 0x199   :  { %244 = vrsqrt.f32 %v157_v39  ;;  %vm166_vm4 = vmor %vm164_vm3, %vm165_vm2  ;;  %vm174_vm6 = vweird.f32 %v157_v39 }
 0x19a   :  { %v160_v41 = vmul.f32 %v243_v38, %v159_v40 }
 0x19c   :  { %v161_v42 = vmul.f32 0.5, %v160_v41 }
 0x19e   :  { %v162_v43 = vsub.f32 1.5, %v161_v42 }
 0x19f   :  { %v245_v44 = vpop.eup %244 }
 0x1a0   :  { %v163_v45 = vmul.f32 %v243_v38, %v162_v43  ;;  %v169_v46 = vmul.f32 %v245_v44, %v157_v39  ;;  %vm175_vm5 = vweird.f32 %v245_v44 }
 0x1a1   :  { %vm176_vm8 = vmor %vm174_vm6, %vm175_vm5 }
 0x1a2   :  { %v167_v48 = vsel %vm166_vm4, %v243_v38, %v163_v45  ;;  %v170_v49 = vmul.f32 %v245_v44, %v169_v46 }
 0x1a3   :  { %v178_v51 = vmul.f32 %v167_v48, %v144_v25 }
 0x1a4   :  { %v171_v52 = vmul.f32 0.5, %v170_v49 }
 0x1a5   :  { %v181_v53 = vmul.f32 %v180_v47, %v178_v51 }
 0x1a6   :  { %v172_v54 = vsub.f32 1.5, %v171_v52 }
 0x1a7   :  { %v184_v55 = vadd.f32 %v183_v50, %v181_v53 }
 0x1a8   :  { %v173_v56 = vmul.f32 %v245_v44, %v172_v54 }
 0x1a9   :  { %v186_v57 = vpack.c.bf16 %v184_v55, %v184_v55 }
 0x1aa   :  { %v177_v58 = vsel %vm176_vm8, %v245_v44, %v173_v56 }
 0x1ab   :  { %v179_v59 = vmul.f32 %v177_v58, %v145_v30  ;;  %189 = vst.msk [vmem:[#allocation10] sm:$0xf] %vm188_vm7, %v186_v57 }
 0x1ad   :  { %v182_v60 = vmul.f32 %v180_v47, %v179_v59 }
 0x1af   :  { %v185_v61 = vadd.f32 %v183_v50, %v182_v60 }
 0x1b1   :  { %v187_v62 = vpack.c.bf16 %v185_v61, %v185_v61 }
 0x1b3   :  { %190 = vst.msk [vmem:[#allocation10 + $0x4] sm:$0xf] %vm188_vm7, %v187_v62 }
 0x1b4   :  { %203 = dma.vmem_to_hbm [thread:$0]  %s196_s8, 128, %s198_s11, [#allocation4], %s375_s23, %s375_s23, %s376_s24  }
 0x1b5   :  { %372 = dma.done.wait [#allocation4], 128  }
 0x1b6   :  { %373 = vsyncadd [#allocation4], 4294967168 }
 0x1b7   :  { %208 = vsyncpa [#allocation3], 1 }
 0x1b8   :  { %209 = vsyncpa [#allocation6], 1 }
 0x1b9   :  { %210 = vsyncpa [#allocation9], 1 }
 0x1ba   :  { %211 = vsyncpa [#allocation4], 1 }

</bundles_post_ra>
